<compile_context>
chip_gen: v6e
topology: v6e:2x2x1
jax: 0.10.0
libtpu: 0.0.40
codegen_flags: <defaults>
</compile_context>

<pallas_src>
import math

import jax
import jax.numpy as jnp
from jax import lax
from jax.experimental import pallas as pl
from jax.experimental.pallas import tpu as pltpu

# Small config consistent with the module (cfg.dim, cfg.n_heads, cfg.dim_ff).
B, S, D = 2, 8, 32
H = 4
DH = D // H
DFF = 64
BS = B * S


def block_kernel(x_ref, bias_ref,
                 wqkv_ref, bqkv_ref,
                 wo_ref, bo_ref,
                 w1_ref, b1_ref,
                 w2_ref, b2_ref,
                 out_ref,
                 qkv_ref, ctx_ref):
    x = x_ref[...]                                             # (B*S, D)

    # Fused q/k/v projection: one (B*S, D) x (D, 3D) MXU op + one bias add.
    # Columns are head-major: [q0|k0|v0|q1|k1|v1|...]; the 1/sqrt(DH) scale is
    # already folded into the q columns.  Written once to VMEM scratch so the
    # per-head operands below are ref-slice loads, not value lane slices.
    qkv_ref[...] = jnp.dot(x, wqkv_ref[...],
                           preferred_element_type=jnp.float32) + bqkv_ref[...]

    # Precomputed additive attention bias shared by all heads: causal within a
    # sequence, fully masked across batches (both batches share one
    # (B*S, B*S) score matrix per head).
    bias = bias_ref[...]                                       # (B*S, B*S)

    for h in range(H):
        base = 3 * DH * h
        q_h = qkv_ref[:, pl.ds(base, DH)]                  # (B*S, DH), scaled
        k_h = qkv_ref[:, pl.ds(base + DH, DH)]
        v_h = qkv_ref[:, pl.ds(base + 2 * DH, DH)]

        # scores = q @ k^T (contract the head dim; no explicit transpose)
        s = lax.dot_general(q_h, k_h, (((1,), (1,)), ((), ())),
                            preferred_element_type=jnp.float32) + bias

        # masked softmax over keys (reciprocal on the EUP slot)
        m = jnp.max(s, axis=-1, keepdims=True)
        e = jnp.exp(s - m)
        inv = pl.reciprocal(jnp.sum(e, axis=-1, keepdims=True), approx=True)
        p = e * inv

        # per-head context dropped into its lane span of the ctx scratch
        ctx_ref[:, pl.ds(h * DH, DH)] = jnp.dot(
            p, v_h, preferred_element_type=jnp.float32)        # (B*S, DH)

    # Single fused output projection.  Wp (Block.proj) is folded into wo_ref /
    # bo_ref, so this directly yields the residual branch:
    #   h1 = x + (ctx @ Wo + bo) @ Wp + bp  ==  x + ctx @ wo_f + bo_f
    attn = jnp.dot(ctx_ref[...], wo_ref[...],
                   preferred_element_type=jnp.float32)
    h1 = x + attn + bo_ref[...]

    # h = h + fc2(relu(fc1(h)))
    f = jnp.dot(h1, w1_ref[...], preferred_element_type=jnp.float32) + b1_ref[...]
    f = jnp.maximum(f, 0.0)
    f = jnp.dot(f, w2_ref[...], preferred_element_type=jnp.float32) + b2_ref[...]

    out_ref[...] = (h1 + f).astype(out_ref.dtype)


def attention_bias():
    """(B*S, B*S) additive bias: causal within a sequence, -inf across batches."""
    idx = jnp.arange(BS)
    same_seq = (idx[:, None] // S) == (idx[None, :] // S)
    causal = idx[None, :] <= idx[:, None]
    keep = jnp.logical_and(same_seq, causal)
    return jnp.where(keep, 0.0, -1e30).astype(jnp.float32)


def fuse_params(params):
    """Build fused / head-major kernel parameters from PyTorch-style ones."""
    wq, bq, wk, bk, wv, bv, wo, bo, wp, bp, w1, b1, w2, b2 = params
    scale = 1.0 / math.sqrt(DH)
    wq_s, bq_s = wq * scale, bq * scale

    # Head-major fused QKV: columns [q_h | k_h | v_h] per head.
    w_cols, b_cols = [], []
    for h in range(H):
        sl = slice(h * DH, (h + 1) * DH)
        w_cols += [wq_s[:, sl], wk[:, sl], wv[:, sl]]
        b_cols += [bq_s[:, sl], bk[:, sl], bv[:, sl]]
    wqkv = jnp.concatenate(w_cols, axis=1)    # (D, 3D)
    bqkv = jnp.concatenate(b_cols, axis=1)    # (1, 3D)

    # Fold the residual projection (Block.proj) into the attention output.
    wo_f = wo @ wp                            # (D, D)
    bo_f = bo @ wp + bp                       # (1, D)

    bias = attention_bias()                   # (B*S, B*S) additive mask
    return (bias, wqkv, bqkv, wo_f, bo_f, w1, b1, w2, b2)


@jax.jit
def block_forward(x, kparams):
    """x: (B, S, D); kparams: output of fuse_params()."""
    x2 = x.reshape(BS, D)
    vmem = pl.BlockSpec(memory_space=pltpu.MemorySpace.VMEM)
    out2 = pl.pallas_call(
        block_kernel,
        out_shape=jax.ShapeDtypeStruct((BS, D), jnp.float32),
        in_specs=[vmem] * (1 + len(kparams)),
        out_specs=vmem,
        scratch_shapes=[pltpu.VMEM((BS, 3 * D), jnp.float32),   # fused qkv
                        pltpu.VMEM((BS, D), jnp.float32)],      # concat ctx
    )(x2, *kparams)
    return out2.reshape(B, S, D)


def init_params(key):
    ks = jax.random.split(key, 14)

    def lin(kw, kb, fin, fout):
        w = jax.random.normal(kw, (fin, fout), jnp.float32) / math.sqrt(fin)
        b = 0.01 * jax.random.normal(kb, (1, fout), jnp.float32)
        return w, b

    wq, bq = lin(ks[0], ks[1], D, D)
    wk, bk = lin(ks[2], ks[3], D, D)
    wv, bv = lin(ks[4], ks[5], D, D)
    wo, bo = lin(ks[6], ks[7], D, D)      # attention output linear
    wp, bp = lin(ks[8], ks[9], D, D)      # Block.proj
    w1, b1 = lin(ks[10], ks[11], D, DFF)  # pwff.fc1
    w2, b2 = lin(ks[12], ks[13], DFF, D)  # pwff.fc2
    return (wq, bq, wk, bk, wv, bv, wo, bo, wp, bp, w1, b1, w2, b2)


def reference(x, params):
    """Pure-JAX mirror of the PyTorch forward (head split -> concat)."""
    wq, bq, wk, bk, wv, bv, wo, bo, wp, bp, w1, b1, w2, b2 = params
    q, k, v = x @ wq + bq, x @ wk + bk, x @ wv + bv

    def split(t):
        return t.reshape(B, S, H, DH).transpose(0, 2, 1, 3)

    qh, kh, vh = split(q), split(k), split(v)
    s = jnp.einsum('bhqd,bhkd->bhqk', qh, kh) / math.sqrt(DH)
    mask = jnp.triu(jnp.ones((S, S), bool), 1)
    s = jnp.where(mask, -jnp.inf, s)
    p = jax.nn.softmax(s, axis=-1)
    ctx = jnp.einsum('bhqk,bhkd->bhqd', p, vh).transpose(0, 2, 1, 3).reshape(B, S, D)
    attn = ctx @ wo + bo
    h1 = x + attn @ wp + bp
    ff = jax.nn.relu(h1 @ w1 + b1) @ w2 + b2
    return h1 + ff


if __name__ == "__main__":
    key = jax.random.PRNGKey(0)
    kx, kp = jax.random.split(key)
    x = jax.random.normal(kx, (B, S, D), jnp.float32)
    # NOTE: Block.forward takes an unused `seg` argument; it is ignored here.
    params = init_params(kp)            # PyTorch-layout parameters
    kparams = fuse_params(params)       # fused (Wp-folded, head-major) params

    out = jax.block_until_ready(block_forward(x, kparams))

    ref = reference(x, params)
    assert out.shape == (B, S, D)
    # approx=True softmax reciprocal + exact algebraic fusions -> relaxed tol
    assert jnp.allclose(out, ref, atol=1e-2, rtol=1e-2), (
        float(jnp.max(jnp.abs(out - ref))))
    print("KERNEL_OK")
</pallas_src>

<mosaic_0001>
module attributes {stable_mosaic.version = 11 : i64} {
  func.func @block_kernel(%arg0: memref<16x32xf32, #tpu.memory_space<vmem>>, %arg1: memref<16x16xf32, #tpu.memory_space<vmem>>, %arg2: memref<32x96xf32, #tpu.memory_space<vmem>>, %arg3: memref<1x96xf32, #tpu.memory_space<vmem>>, %arg4: memref<32x32xf32, #tpu.memory_space<vmem>>, %arg5: memref<1x32xf32, #tpu.memory_space<vmem>>, %arg6: memref<32x64xf32, #tpu.memory_space<vmem>>, %arg7: memref<1x64xf32, #tpu.memory_space<vmem>>, %arg8: memref<64x32xf32, #tpu.memory_space<vmem>>, %arg9: memref<1x32xf32, #tpu.memory_space<vmem>>, %arg10: memref<16x32xf32, #tpu.memory_space<vmem>>, %arg11: memref<16x96xf32, #tpu.memory_space<vmem>>, %arg12: memref<16x32xf32, #tpu.memory_space<vmem>>) attributes {dimension_semantics = [], scalar_prefetch = 0 : i64, scratch_operands = 2 : i64, tpu.core_type = #tpu.core_type<tc>} {
    %c0 = arith.constant 0 : index
    %c0_0 = arith.constant 0 : index
    %0 = vector.load %arg0[%c0, %c0_0] : memref<16x32xf32, #tpu.memory_space<vmem>>, vector<16x32xf32>
    %c0_1 = arith.constant 0 : index
    %c0_2 = arith.constant 0 : index
    %1 = vector.load %arg2[%c0_1, %c0_2] : memref<32x96xf32, #tpu.memory_space<vmem>>, vector<32x96xf32>
    %cst = arith.constant dense<0.000000e+00> : vector<16x96xf32>
    %2 = tpu.matmul %0, %1, %cst {dimension_numbers = #tpu.dot_dimension_numbers<[1], [0], [0], [1], [0, 0, 1, 1], [], []>} : vector<16x32xf32>, vector<32x96xf32>, vector<16x96xf32> -> vector<16x96xf32>
    %c0_3 = arith.constant 0 : index
    %c0_4 = arith.constant 0 : index
    %3 = vector.load %arg3[%c0_3, %c0_4] : memref<1x96xf32, #tpu.memory_space<vmem>>, vector<1x96xf32>
    %4 = vector.broadcast %3 : vector<1x96xf32> to vector<16x96xf32>
    %5 = arith.addf %2, %4 : vector<16x96xf32>
    %c0_5 = arith.constant 0 : index
    %c0_6 = arith.constant 0 : index
    %6 = vector.load %arg11[%c0_5, %c0_6] : memref<16x96xf32, #tpu.memory_space<vmem>>, vector<16x96xf32>
    tpu.vector_store %arg11[%c0_5, %c0_6], %5 {strides = array<i32>} : memref<16x96xf32, #tpu.memory_space<vmem>>, vector<16x96xf32>,
    %c0_7 = arith.constant 0 : index
    %c0_8 = arith.constant 0 : index
    %7 = vector.load %arg1[%c0_7, %c0_8] : memref<16x16xf32, #tpu.memory_space<vmem>>, vector<16x16xf32>
    %c0_9 = arith.constant 0 : index
    %c0_10 = arith.constant 0 : index
    %8 = vector.load %arg11[%c0_9, %c0_10] : memref<16x96xf32, #tpu.memory_space<vmem>>, vector<16x8xf32>
    %c0_11 = arith.constant 0 : index
    %c8 = arith.constant 8 : index
    %9 = vector.load %arg11[%c0_11, %c8] : memref<16x96xf32, #tpu.memory_space<vmem>>, vector<16x8xf32>
    %c0_12 = arith.constant 0 : index
    %c16 = arith.constant 16 : index
    %10 = vector.load %arg11[%c0_12, %c16] : memref<16x96xf32, #tpu.memory_space<vmem>>, vector<16x8xf32>
    %cst_13 = arith.constant dense<0.000000e+00> : vector<16x16xf32>
    %11 = tpu.matmul %8, %9, %cst_13 {dimension_numbers = #tpu.dot_dimension_numbers<[1], [1], [0], [0], [0, 0, 1, 0], [], []>} : vector<16x8xf32>, vector<16x8xf32>, vector<16x16xf32> -> vector<16x16xf32>
    %12 = arith.addf %11, %7 : vector<16x16xf32>
    %cst_14 = arith.constant dense<0xFF800000> : vector<16xf32>
    %13 = vector.multi_reduction <maximumf>, %12, %cst_14 [1] : vector<16x16xf32> to vector<16xf32>
    %14 = vector.shape_cast %13 : vector<16xf32> to vector<16x1xf32>
    %15 = vector.broadcast %14 : vector<16x1xf32> to vector<16x16xf32>
    %16 = arith.subf %12, %15 : vector<16x16xf32>
    %17 = math.exp %16 : vector<16x16xf32>
    %cst_15 = arith.constant dense<0.000000e+00> : vector<16xf32>
    %18 = vector.multi_reduction <add>, %17, %cst_15 [1] : vector<16x16xf32> to vector<16xf32>
    %19 = vector.shape_cast %18 : vector<16xf32> to vector<16x1xf32>
    %20 = tpu.reciprocal %19 {approx = true} : vector<16x1xf32> -> vector<16x1xf32>
    %21 = vector.broadcast %20 : vector<16x1xf32> to vector<16x16xf32>
    %22 = arith.mulf %17, %21 : vector<16x16xf32>
    %cst_16 = arith.constant dense<0.000000e+00> : vector<16x8xf32>
    %23 = tpu.matmul %22, %10, %cst_16 {dimension_numbers = #tpu.dot_dimension_numbers<[1], [0], [0], [1], [0, 0, 1, 1], [], []>} : vector<16x16xf32>, vector<16x8xf32>, vector<16x8xf32> -> vector<16x8xf32>
    %c0_17 = arith.constant 0 : index
    %c0_18 = arith.constant 0 : index
    %24 = vector.load %arg12[%c0_17, %c0_18] : memref<16x32xf32, #tpu.memory_space<vmem>>, vector<16x8xf32>
    tpu.vector_store %arg12[%c0_17, %c0_18], %23 {strides = array<i32>} : memref<16x32xf32, #tpu.memory_space<vmem>>, vector<16x8xf32>,
    %c0_19 = arith.constant 0 : index
    %c24 = arith.constant 24 : index
    %25 = vector.load %arg11[%c0_19, %c24] : memref<16x96xf32, #tpu.memory_space<vmem>>, vector<16x8xf32>
    %c0_20 = arith.constant 0 : index
    %c32 = arith.constant 32 : index
    %26 = vector.load %arg11[%c0_20, %c32] : memref<16x96xf32, #tpu.memory_space<vmem>>, vector<16x8xf32>
    %c0_21 = arith.constant 0 : index
    %c40 = arith.constant 40 : index
    %27 = vector.load %arg11[%c0_21, %c40] : memref<16x96xf32, #tpu.memory_space<vmem>>, vector<16x8xf32>
    %cst_22 = arith.constant dense<0.000000e+00> : vector<16x16xf32>
    %28 = tpu.matmul %25, %26, %cst_22 {dimension_numbers = #tpu.dot_dimension_numbers<[1], [1], [0], [0], [0, 0, 1, 0], [], []>} : vector<16x8xf32>, vector<16x8xf32>, vector<16x16xf32> -> vector<16x16xf32>
    %29 = arith.addf %28, %7 : vector<16x16xf32>
    %cst_23 = arith.constant dense<0xFF800000> : vector<16xf32>
    %30 = vector.multi_reduction <maximumf>, %29, %cst_23 [1] : vector<16x16xf32> to vector<16xf32>
    %31 = vector.shape_cast %30 : vector<16xf32> to vector<16x1xf32>
    %32 = vector.broadcast %31 : vector<16x1xf32> to vector<16x16xf32>
    %33 = arith.subf %29, %32 : vector<16x16xf32>
    %34 = math.exp %33 : vector<16x16xf32>
    %cst_24 = arith.constant dense<0.000000e+00> : vector<16xf32>
    %35 = vector.multi_reduction <add>, %34, %cst_24 [1] : vector<16x16xf32> to vector<16xf32>
    %36 = vector.shape_cast %35 : vector<16xf32> to vector<16x1xf32>
    %37 = tpu.reciprocal %36 {approx = true} : vector<16x1xf32> -> vector<16x1xf32>
    %38 = vector.broadcast %37 : vector<16x1xf32> to vector<16x16xf32>
    %39 = arith.mulf %34, %38 : vector<16x16xf32>
    %cst_25 = arith.constant dense<0.000000e+00> : vector<16x8xf32>
    %40 = tpu.matmul %39, %27, %cst_25 {dimension_numbers = #tpu.dot_dimension_numbers<[1], [0], [0], [1], [0, 0, 1, 1], [], []>} : vector<16x16xf32>, vector<16x8xf32>, vector<16x8xf32> -> vector<16x8xf32>
    %c0_26 = arith.constant 0 : index
    %c8_27 = arith.constant 8 : index
    %41 = vector.load %arg12[%c0_26, %c8_27] : memref<16x32xf32, #tpu.memory_space<vmem>>, vector<16x8xf32>
    tpu.vector_store %arg12[%c0_26, %c8_27], %40 {strides = array<i32>} : memref<16x32xf32, #tpu.memory_space<vmem>>, vector<16x8xf32>,
    %c0_28 = arith.constant 0 : index
    %c48 = arith.constant 48 : index
    %42 = vector.load %arg11[%c0_28, %c48] : memref<16x96xf32, #tpu.memory_space<vmem>>, vector<16x8xf32>
    %c0_29 = arith.constant 0 : index
    %c56 = arith.constant 56 : index
    %43 = vector.load %arg11[%c0_29, %c56] : memref<16x96xf32, #tpu.memory_space<vmem>>, vector<16x8xf32>
    %c0_30 = arith.constant 0 : index
    %c64 = arith.constant 64 : index
    %44 = vector.load %arg11[%c0_30, %c64] : memref<16x96xf32, #tpu.memory_space<vmem>>, vector<16x8xf32>
    %cst_31 = arith.constant dense<0.000000e+00> : vector<16x16xf32>
    %45 = tpu.matmul %42, %43, %cst_31 {dimension_numbers = #tpu.dot_dimension_numbers<[1], [1], [0], [0], [0, 0, 1, 0], [], []>} : vector<16x8xf32>, vector<16x8xf32>, vector<16x16xf32> -> vector<16x16xf32>
    %46 = arith.addf %45, %7 : vector<16x16xf32>
    %cst_32 = arith.constant dense<0xFF800000> : vector<16xf32>
    %47 = vector.multi_reduction <maximumf>, %46, %cst_32 [1] : vector<16x16xf32> to vector<16xf32>
    %48 = vector.shape_cast %47 : vector<16xf32> to vector<16x1xf32>
    %49 = vector.broadcast %48 : vector<16x1xf32> to vector<16x16xf32>
    %50 = arith.subf %46, %49 : vector<16x16xf32>
    %51 = math.exp %50 : vector<16x16xf32>
    %cst_33 = arith.constant dense<0.000000e+00> : vector<16xf32>
    %52 = vector.multi_reduction <add>, %51, %cst_33 [1] : vector<16x16xf32> to vector<16xf32>
    %53 = vector.shape_cast %52 : vector<16xf32> to vector<16x1xf32>
    %54 = tpu.reciprocal %53 {approx = true} : vector<16x1xf32> -> vector<16x1xf32>
    %55 = vector.broadcast %54 : vector<16x1xf32> to vector<16x16xf32>
    %56 = arith.mulf %51, %55 : vector<16x16xf32>
    %cst_34 = arith.constant dense<0.000000e+00> : vector<16x8xf32>
    %57 = tpu.matmul %56, %44, %cst_34 {dimension_numbers = #tpu.dot_dimension_numbers<[1], [0], [0], [1], [0, 0, 1, 1], [], []>} : vector<16x16xf32>, vector<16x8xf32>, vector<16x8xf32> -> vector<16x8xf32>
    %c0_35 = arith.constant 0 : index
    %c16_36 = arith.constant 16 : index
    %58 = vector.load %arg12[%c0_35, %c16_36] : memref<16x32xf32, #tpu.memory_space<vmem>>, vector<16x8xf32>
    tpu.vector_store %arg12[%c0_35, %c16_36], %57 {strides = array<i32>} : memref<16x32xf32, #tpu.memory_space<vmem>>, vector<16x8xf32>,
    %c0_37 = arith.constant 0 : index
    %c72 = arith.constant 72 : index
    %59 = vector.load %arg11[%c0_37, %c72] : memref<16x96xf32, #tpu.memory_space<vmem>>, vector<16x8xf32>
    %c0_38 = arith.constant 0 : index
    %c80 = arith.constant 80 : index
    %60 = vector.load %arg11[%c0_38, %c80] : memref<16x96xf32, #tpu.memory_space<vmem>>, vector<16x8xf32>
    %c0_39 = arith.constant 0 : index
    %c88 = arith.constant 88 : index
    %61 = vector.load %arg11[%c0_39, %c88] : memref<16x96xf32, #tpu.memory_space<vmem>>, vector<16x8xf32>
    %cst_40 = arith.constant dense<0.000000e+00> : vector<16x16xf32>
    %62 = tpu.matmul %59, %60, %cst_40 {dimension_numbers = #tpu.dot_dimension_numbers<[1], [1], [0], [0], [0, 0, 1, 0], [], []>} : vector<16x8xf32>, vector<16x8xf32>, vector<16x16xf32> -> vector<16x16xf32>
    %63 = arith.addf %62, %7 : vector<16x16xf32>
    %cst_41 = arith.constant dense<0xFF800000> : vector<16xf32>
    %64 = vector.multi_reduction <maximumf>, %63, %cst_41 [1] : vector<16x16xf32> to vector<16xf32>
    %65 = vector.shape_cast %64 : vector<16xf32> to vector<16x1xf32>
    %66 = vector.broadcast %65 : vector<16x1xf32> to vector<16x16xf32>
    %67 = arith.subf %63, %66 : vector<16x16xf32>
    %68 = math.exp %67 : vector<16x16xf32>
    %cst_42 = arith.constant dense<0.000000e+00> : vector<16xf32>
    %69 = vector.multi_reduction <add>, %68, %cst_42 [1] : vector<16x16xf32> to vector<16xf32>
    %70 = vector.shape_cast %69 : vector<16xf32> to vector<16x1xf32>
    %71 = tpu.reciprocal %70 {approx = true} : vector<16x1xf32> -> vector<16x1xf32>
    %72 = vector.broadcast %71 : vector<16x1xf32> to vector<16x16xf32>
    %73 = arith.mulf %68, %72 : vector<16x16xf32>
    %cst_43 = arith.constant dense<0.000000e+00> : vector<16x8xf32>
    %74 = tpu.matmul %73, %61, %cst_43 {dimension_numbers = #tpu.dot_dimension_numbers<[1], [0], [0], [1], [0, 0, 1, 1], [], []>} : vector<16x16xf32>, vector<16x8xf32>, vector<16x8xf32> -> vector<16x8xf32>
    %c0_44 = arith.constant 0 : index
    %c24_45 = arith.constant 24 : index
    %75 = vector.load %arg12[%c0_44, %c24_45] : memref<16x32xf32, #tpu.memory_space<vmem>>, vector<16x8xf32>
    tpu.vector_store %arg12[%c0_44, %c24_45], %74 {strides = array<i32>} : memref<16x32xf32, #tpu.memory_space<vmem>>, vector<16x8xf32>,
    %c0_46 = arith.constant 0 : index
    %c0_47 = arith.constant 0 : index
    %76 = vector.load %arg12[%c0_46, %c0_47] : memref<16x32xf32, #tpu.memory_space<vmem>>, vector<16x32xf32>
    %c0_48 = arith.constant 0 : index
    %c0_49 = arith.constant 0 : index
    %77 = vector.load %arg4[%c0_48, %c0_49] : memref<32x32xf32, #tpu.memory_space<vmem>>, vector<32x32xf32>
    %cst_50 = arith.constant dense<0.000000e+00> : vector<16x32xf32>
    %78 = tpu.matmul %76, %77, %cst_50 {dimension_numbers = #tpu.dot_dimension_numbers<[1], [0], [0], [1], [0, 0, 1, 1], [], []>} : vector<16x32xf32>, vector<32x32xf32>, vector<16x32xf32> -> vector<16x32xf32>
    %79 = arith.addf %0, %78 : vector<16x32xf32>
    %c0_51 = arith.constant 0 : index
    %c0_52 = arith.constant 0 : index
    %80 = vector.load %arg5[%c0_51, %c0_52] : memref<1x32xf32, #tpu.memory_space<vmem>>, vector<1x32xf32>
    %81 = vector.broadcast %80 : vector<1x32xf32> to vector<16x32xf32>
    %82 = arith.addf %79, %81 : vector<16x32xf32>
    %c0_53 = arith.constant 0 : index
    %c0_54 = arith.constant 0 : index
    %83 = vector.load %arg6[%c0_53, %c0_54] : memref<32x64xf32, #tpu.memory_space<vmem>>, vector<32x64xf32>
    %cst_55 = arith.constant dense<0.000000e+00> : vector<16x64xf32>
    %84 = tpu.matmul %82, %83, %cst_55 {dimension_numbers = #tpu.dot_dimension_numbers<[1], [0], [0], [1], [0, 0, 1, 1], [], []>} : vector<16x32xf32>, vector<32x64xf32>, vector<16x64xf32> -> vector<16x64xf32>
    %c0_56 = arith.constant 0 : index
    %c0_57 = arith.constant 0 : index
    %85 = vector.load %arg7[%c0_56, %c0_57] : memref<1x64xf32, #tpu.memory_space<vmem>>, vector<1x64xf32>
    %86 = vector.broadcast %85 : vector<1x64xf32> to vector<16x64xf32>
    %87 = arith.addf %84, %86 : vector<16x64xf32>
    %cst_58 = arith.constant 0.000000e+00 : f32
    %88 = vector.broadcast %cst_58 : f32 to vector<16x64xf32>
    %89 = arith.maximumf %87, %88 : vector<16x64xf32>
    %c0_59 = arith.constant 0 : index
    %c0_60 = arith.constant 0 : index
    %90 = vector.load %arg8[%c0_59, %c0_60] : memref<64x32xf32, #tpu.memory_space<vmem>>, vector<64x32xf32>
    %cst_61 = arith.constant dense<0.000000e+00> : vector<16x32xf32>
    %91 = tpu.matmul %89, %90, %cst_61 {dimension_numbers = #tpu.dot_dimension_numbers<[1], [0], [0], [1], [0, 0, 1, 1], [], []>} : vector<16x64xf32>, vector<64x32xf32>, vector<16x32xf32> -> vector<16x32xf32>
    %c0_62 = arith.constant 0 : index
    %c0_63 = arith.constant 0 : index
    %92 = vector.load %arg9[%c0_62, %c0_63] : memref<1x32xf32, #tpu.memory_space<vmem>>, vector<1x32xf32>
    %93 = vector.broadcast %92 : vector<1x32xf32> to vector<16x32xf32>
    %94 = arith.addf %91, %93 : vector<16x32xf32>
    %95 = arith.addf %82, %94 : vector<16x32xf32>
    %c0_64 = arith.constant 0 : index
    %c0_65 = arith.constant 0 : index
    %96 = vector.load %arg10[%c0_64, %c0_65] : memref<16x32xf32, #tpu.memory_space<vmem>>, vector<16x32xf32>
    tpu.vector_store %arg10[%c0_64, %c0_65], %95 {strides = array<i32>} : memref<16x32xf32, #tpu.memory_space<vmem>>, vector<16x32xf32>,
    return
  }
}

</mosaic_0001>

<bundles_post_ra>
// kernel: block_forward.1
= control target key start
LH: loop header
LB: loop body
LE: loop exit
PB: predicated region body
PF: predicated region fallthrough
CT: control target
= control target key end

     0   :  { %15 = vsyncpa [#allocation5], 0  ;;  %s1925_s0 = inlined_call_operand.hbm [shape: f32[16,32], index: 0, kind: input, shape index: {}]   ;;  %s1926_s1 = inlined_call_operand.hbm [shape: f32[16,16], index: 1, kind: input, shape index: {}]   ;;  %s1927_s2 = inlined_call_operand.vmem [shape: f32[32,96], index: 2, kind: input, shape index: {}]   ;;  %s1928_s3 = inlined_call_operand.vmem [shape: f32[1,96], index: 3, kind: input, shape index: {}]   ;;  %s1929_s4 = inlined_call_operand.vmem [shape: f32[32,32], index: 4, kind: input, shape index: {}]   ;;  %s1930_s5 = inlined_call_operand.vmem [shape: f32[1,32], index: 5, kind: input, shape index: {}]   ;;  %s1931_s6 = inlined_call_operand.vmem [shape: f32[32,64], index: 6, kind: input, shape index: {}]   ;;  %s1932_s7 = inlined_call_operand.vmem [shape: f32[1,64], index: 7, kind: input, shape index: {}]   ;;  %s1933_s8 = inlined_call_operand.vmem [shape: f32[64,32], index: 8, kind: input, shape index: {}]   ;;  %s1934_s9 = inlined_call_operand.vmem [shape: f32[1,32], index: 9, kind: input, shape index: {}]   ;;  %s1935_s10 = inlined_call_operand.hbm [shape: f32[16,32], index: 10, kind: output, shape index: {}]  }
   0x1   :  { %16 = vsyncpa [#allocation8], 0 }
   0x2   :  { %17 = vsyncpa [#allocation6], 0  ;;  %s1644_s13 = smov [#allocation4]  }
   0x3   :  { %s23_s14 = sshll.u32 %s1644_s13, 4  ;;  %s24_s14 = int_to_ptr.vmem [resolvable:$true] %s23_s14 }
   0x4   :  { %s1586_s15 = scalar_lea.vmem %s24_s14, 256  ;;  %p1591_p1 = scmp.lt.s32.totalorder %s24_s14, %s24_s14 }
   0x5   :  { %p1587_p0 = scmp.ne.s32.totalorder %s24_s14, %s1586_s15  ;;  %p1592_p2 = scmp.lt.s32.totalorder %s1586_s15, %s1586_s15 }
   0x7   :  { %p1593_p3 = por %p1592_p2, %p1591_p1 }
   0x9   :  { %p1594_p4 = pnand %p1593_p3, %p1587_p0 }
   0xb   :  { %1597 = shalt.err (!%p1594_p4)
}
   0xc   :  { %s1645_s16 = smov 128   ;;  %s1646_s17 = smov 8  }
   0xd   :  { %29 = dma.hbm_to_vmem [thread:$0]  %s1925_s0, 256, %s24_s14, [#allocation5], %s1645_s16, %s1645_s16, %s1646_s17  }
   0xe   :  { %s1647_s20 = smov [#allocation7]  }
   0xf   :  { %s35_s21 = sshll.u32 %s1647_s20, 4  ;;  %s36_s21 = int_to_ptr.vmem [resolvable:$true] %s35_s21 }
  0x10   :  { %s1606_s22 = scalar_lea.vmem %s36_s21, 256  ;;  %p1611_p6 = scmp.lt.s32.totalorder %s36_s21, %s36_s21 }
  0x11   :  { %p1607_p5 = scmp.ne.s32.totalorder %s36_s21, %s1606_s22  ;;  %p1612_p7 = scmp.lt.s32.totalorder %s1606_s22, %s1606_s22 }
  0x13   :  { %p1613_p8 = por %p1612_p7, %p1611_p6 }
  0x15   :  { %p1614_p9 = pnand %p1613_p8, %p1607_p5 }
  0x17   :  { %1617 = shalt.err (!%p1614_p9)
}
  0x18   :  { %41 = dma.hbm_to_vmem [thread:$0]  %s1926_s1, 256, %s36_s21, [#allocation8], %s1645_s16, %s1645_s16, %s1646_s17  }
  0x19   :  { %1638 = dma.done.wait [#allocation5], 256  }
  0x1a   :  { %1639 = vsyncadd [#allocation5], 4294967040 }
  0x1b   :  { %1640 = dma.done.wait [#allocation8], 256  }
  0x1c   :  { %1641 = vsyncadd [#allocation8], 4294967040  ;;  %vm77_vm0 = vcmask 261120   ;;  %v69_v0 = vld [vmem:[%s1927_s2 + $0x18] sm:$0xff]  ;;  %v68_v1 = vld [vmem:[%s1927_s2 + $0x10] sm:$0xff]  ;;  %vm159_vm1 = vcmask 785408  }
  0x1d   :  { %1420 = vmatprep.subr.mxu1 %v69_v0  ;;  %v1735_v2 = vld [vmem:[#allocation4] sm:$0xff]  ;;  %v67_v3 = vld [vmem:[%s1927_s2 + $0x8] sm:$0xff]  ;;  %vm172_vm2 = vcmask 64512   ;;  %s1649_s13 = smov 120   ;;  %v1776_v19 = vld [vmem:[#allocation7 + $0x8] sm:$0xff]  ;;  %vm256_vm3 = vcmask 130048  }
  0x1e   :  { %1421 = vmatpush3.msra.mxu1 %v69_v0  ;;  %1428 = vmatprep.mubr.msk.f32.mxu1 %vm77_vm0, %v1735_v2  ;;  %v66_v4 = vld [vmem:[%s1927_s2] sm:$0xff]  ;;  %v1745_v5 = vld [vmem:[#allocation4 + $0x8] sm:$0xff]  ;;  %s1648_s2 = smov 96   ;;  %v1778_v21 = vld [vmem:[#allocation7] sm:$0xff]  ;;  %s1651_s14 = smov 112   ;;  %vm580_vm4 = vcmask 130112  }
  0x1f   :  { %1422 = vmatprep.subr.mxu1 %v68_v1  ;;  %v1324_v6 = vld [vmem:[%s1928_s3] ss:$0 sm:$0xff]  ;;  %s1650_s3 = smov 104   ;;  %s1652_s15 = smov 88   ;;  %vm795_vm5 = vcmask 195712   ;;  %vm1010_vm6 = vcmask 261312  }
  0x20   :  { %1423 = vmatpush3.msra.mxu1 %v68_v1  ;;  %s1653_s18 = smov 72   ;;  %s1654_s19 = smov 80   ;;  %vm1220_vm7 = vcmask 523264  }
  0x21   :  { %1424 = vmatprep.subr.mxu1 %v67_v3  ;;  %s1655_s20 = smov 64   ;;  %s1656_s21 = smov 48  }
  0x22   :  { %1425 = vmatpush3.msra.mxu1 %v67_v3  ;;  %s1657_s22 = smov 56   ;;  %s1658_s23 = smov 40  }
  0x23   :  { %1426 = vmatprep.subr.mxu1 %v66_v4  ;;  %s1659_s24 = smov 16   ;;  %s1660_s11 = smov 24  }
  0x24   :  { %1427 = vmatpush3.msra.mxu1 %v66_v4 }
  0x25   :  { %1429 = vmatmul.mubr.msk.f32.vlgmr.msra.gmra.mxu1 %vm77_vm0, %v1745_v5 }
  0xe5   :  { %v1430_v7 = vpop.f32.mrf.mxu1 }
  0xe6   :  { %v156_v8 = vadd.f32 %v1430_v7, %v1324_v6 }
  0xe7   :  { %v150_v9 = vpop.f32.mrf.mxu1 }
  0xe8   :  { %161 = vst.msk [vmem:[#allocation2 + $0x8] sm:$0xff] %vm159_vm1, %v156_v8  ;;  %v151_v10 = vadd.f32 %v1324_v6, %v150_v9 }
  0xea   :  { %160 = vst.msk [vmem:[#allocation2] sm:$0xff] %vm159_vm1, %v151_v10 }
  0xef   :  { %v1752_v11 = vld [vmem:[#allocation2 + $0x8] sm:$0xff] }
  0xf0   :  { %378 = vrot.lane.b32.xlu1 %v1752_v11, %s1648_s2  ;;  %170 = vrot.lane.b32.xlu0 %v1752_v11, %s1649_s13 }
  0xf1   :  { %v1756_v12 = vld [vmem:[#allocation2] sm:$0xff] }
  0xf2   :  { %1435 = vmatprep.mubr.msk.f32.mxu1 %vm172_vm2, %v1756_v12 }
  0xf4   :  { %376 = vrot.lane.b32.xlu1 %v1756_v12, %s1648_s2  ;;  %168 = vrot.lane.b32.xlu0 %v1756_v12, %s1649_s13 }
  0xf8   :  { %374 = vrot.lane.b32.xlu1 %v1752_v11, %s1650_s3  ;;  %372 = vrot.lane.b32.xlu0 %v1756_v12, %s1650_s3 }
 0x162   :  { %v171_v13 = vpop.permute.xlu0 %170  ;;  %v379_v14 = vpop.permute.xlu1 %378 }
 0x163   :  { %1431 = vmatprep.subr.msk.mxu1 %vm172_vm2, %v171_v13 }
 0x164   :  { %1432 = vmatpush3.xpose.msk.msra.mxu1 %vm172_vm2, %v171_v13 }
 0x166   :  { %v169_v15 = vpop.permute.xlu0 %168  ;;  %v377_v17 = vpop.permute.xlu1 %376 }
 0x167   :  { %1433 = vmatprep.subr.msk.mxu1 %vm172_vm2, %v169_v15 }
 0x168   :  { %1434 = vmatpush3.xpose.msk.msra.mxu1 %vm172_vm2, %v169_v15 }
 0x169   :  { %1445 = vmatprep.subr.msk.mxu1 %vm172_vm2, %v379_v14 }
 0x16a   :  { %v373_v16 = vpop.permute.xlu0 %372  ;;  %v375_v18 = vpop.permute.xlu1 %374 }
 0x16b   :  { %1436 = vmatmul.mubr.msk.f32.vlgmr.msra.gmra.mxu1 %vm172_vm2, %v1752_v11 }
 0x16c   :  { %1446 = vmatpush3.xpose.msk.msra.mxu1 %vm172_vm2, %v379_v14  ;;  %1449 = vmatprep.mubr.msk.f32.mxu1 %vm172_vm2, %v373_v16 }
 0x16d   :  { %1447 = vmatprep.subr.msk.mxu1 %vm172_vm2, %v377_v17 }
 0x170   :  { %1448 = vmatpush3.xpose.msk.msra.mxu1 %vm172_vm2, %v377_v17 }
 0x173   :  { %1450 = vmatmul.mubr.msk.f32.vlgmr.msra.gmra.mxu1 %vm172_vm2, %v375_v18 }
 0x22b   :  { %v1437_v20 = vpop.f32.mrf.mxu1 }
 0x22c   :  { %v253_v22 = vadd.f32 %v1437_v20, %v1776_v19 }
 0x22d   :  { %v247_v23 = vpop.f32.mrf.mxu1 }
 0x22e   :  { %v248_v24 = vadd.f32 %v247_v23, %v1778_v21  ;;  %v260_v25 = vsel %vm256_vm3, %v253_v22, -inf }
 0x22f   :  { %261 = vmax.xlane.f32.xlu1 %v260_v25 }
 0x230   :  { %v257_v26 = vsel %vm256_vm3, %v248_v24, -inf }
 0x231   :  { %258 = vmax.xlane.f32.xlu0 %v257_v26 }
 0x233   :  { %v1451_v27 = vpop.f32.mrf.mxu1 }
 0x234   :  { %v460_v30 = vadd.f32 %v1451_v27, %v1776_v19 }
 0x235   :  { %v454_v28 = vpop.f32.mrf.mxu1 }
 0x236   :  { %v455_v29 = vadd.f32 %v454_v28, %v1778_v21  ;;  %v466_v32 = vsel %vm256_vm3, %v460_v30, -inf }
 0x238   :  { %v463_v31 = vsel %vm256_vm3, %v455_v29, -inf }
 0x239   :  { %464 = vmax.xlane.f32.xlu0 %v463_v31 }
 0x23d   :  { %467 = vmax.xlane.f32.xlu0 %v466_v32 }
 0x240   :  { %281 = vrot.lane.b32.xlu1 %v1752_v11, %s1651_s14 }
 0x244   :  { %487 = vrot.lane.b32.xlu1 %v1752_v11, %s1652_s15 }
 0x248   :  { %485 = vrot.lane.b32.xlu1 %v1756_v12, %s1652_s15 }
 0x253   :  { %279 = vrot.lane.b32.xlu0 %v1756_v12, %s1651_s14 }
 0x2b8   :  { %v262_v33 = vpop.xlane.xlu1 %261 }
 0x2b9   :  { %v264_v34 = vsub.f32 %v253_v22, %v262_v33 }
 0x2ba   :  { %v259_v35 = vpop.xlane.xlu0 %258 }
 0x2bb   :  { %v267_v36 = vmul.f32 1.442695, %v264_v34  ;;  %v263_v37 = vsub.f32 %v248_v24, %v259_v35 }
 0x2bc   :  { %v282_v38 = vpop.permute.xlu1 %281 }
 0x2bd   :  { %1546 = vpow2.f32 %v267_v36  ;;  %v265_v39 = vmul.f32 1.442695, %v263_v37  ;;  %1438 = vmatprep.subr.mxu0 %v282_v38 }
 0x2be   :  { %1439 = vmatpush3.msra.mxu0 %v282_v38 }
 0x2bf   :  { %1548 = vpow2.f32 %v265_v39 }
 0x2c0   :  { %v488_v48 = vpop.permute.xlu1 %487 }
 0x2c2   :  { %v465_v40 = vpop.xlane.xlu0 %464 }
 0x2c3   :  { %v469_v52 = vsub.f32 %v455_v29, %v465_v40 }
 0x2c4   :  { %v486_v56 = vpop.permute.xlu1 %485 }
 0x2c5   :  { %v471_v53 = vmul.f32 1.442695, %v469_v52 }
 0x2c6   :  { %v468_v41 = vpop.xlane.xlu0 %467 }
 0x2c7   :  { %v470_v42 = vsub.f32 %v460_v30, %v468_v41 }
 0x2c9   :  { %v473_v43 = vmul.f32 1.442695, %v470_v42 }
 0x2ca   :  { %v1547_v44 = vpop.eup %1546  ;;  %v280_v45 = vpop.permute.xlu0 %279 }
 0x2cb   :  { %1550 = vpow2.f32 %v473_v43  ;;  %1440 = vmatprep.subr.mxu0 %v280_v45  ;;  %v272_v46 = vsel %vm256_vm3, %v1547_v44, 0.0 }
 0x2cc   :  { %v1549_v47 = vpop.eup %1548  ;;  %273 = vadd.xlane.f32.xlu0 %v272_v46  ;;  %1441 = vmatpush3.msra.mxu0 %v280_v45  ;;  %1552 = vpow2.f32 %v471_v53 }
 0x2cd   :  { %1452 = vmatprep.subr.mxu0 %v488_v48  ;;  %v269_v49 = vsel %vm256_vm3, %v1549_v47, 0.0 }
 0x2ce   :  { %270 = vadd.xlane.f32.xlu1 %v269_v49 }
 0x2d8   :  { %v1551_v50 = vpop.eup %1550 }
 0x2d9   :  { %v478_v51 = vsel %vm256_vm3, %v1551_v50, 0.0  ;;  %v1553_v54 = vpop.eup %1552 }
 0x2da   :  { %479 = vadd.xlane.f32.xlu0 %v478_v51  ;;  %v475_v55 = vsel %vm256_vm3, %v1553_v54, 0.0 }
 0x2df   :  { %591 = vrot.lane.b32.xlu1 %v1756_v12, %s1653_s18 }
 0x2f0   :  { %593 = vrot.lane.b32.xlu0 %v1752_v11, %s1653_s18 }
 0x2f4   :  { %587 = vrot.lane.b32.xlu0 %v1756_v12, %s1654_s19 }
 0x303   :  { %476 = vadd.xlane.f32.xlu1 %v475_v55 }
 0x314   :  { %589 = vrot.lane.b32.xlu1 %v1752_v11, %s1654_s19 }
 0x355   :  { %v274_v57 = vpop.xlane.xlu0 %273 }
 0x356   :  { %1554 = vrcp.f32 %v274_v57 }
 0x357   :  { %v271_v58 = vpop.xlane.xlu1 %270 }
 0x358   :  { %1556 = vrcp.f32 %v271_v58 }
 0x35b   :  { %v592_v1 = vpop.permute.xlu1 %591 }
 0x363   :  { %v1555_v59 = vpop.eup %1554  ;;  %v480_v61 = vpop.xlane.xlu0 %479 }
 0x364   :  { %v278_v63 = vmul.f32 %v1555_v59, %v1547_v44  ;;  %1558 = vrcp.f32 %v480_v61 }
 0x365   :  { %v1557_v60 = vpop.eup %1556 }
 0x366   :  { %v277_v62 = vmul.f32 %v1557_v60, %v1549_v47 }
 0x367   :  { %v594_v0 = vpop.permute.xlu0 %593 }
 0x368   :  { %1442 = vmatprep.mubr.msk.f32.mxu0 %vm256_vm3, %v277_v62 }
 0x369   :  { %1443 = vmatmul.mubr.msk.f32.vlgmr.msra.gmra.mxu0 %vm256_vm3, %v278_v63 }
 0x36a   :  { %1453 = vmatpush3.msra.mxu0 %v488_v48 }
 0x36b   :  { %1454 = vmatprep.subr.mxu0 %v486_v56  ;;  %v588_v9 = vpop.permute.xlu0 %587 }
 0x36c   :  { %1455 = vmatpush3.msra.mxu0 %v486_v56 }
 0x36d   :  { %1459 = vmatprep.subr.msk.mxu0 %vm172_vm2, %v594_v0 }
 0x371   :  { %v1559_v4 = vpop.eup %1558 }
 0x372   :  { %v484_v8 = vmul.f32 %v1559_v4, %v1551_v50 }
 0x38c   :  { %v477_v3 = vpop.xlane.xlu1 %476 }
 0x38d   :  { %1560 = vrcp.f32 %v477_v3 }
 0x390   :  { %v590_v10 = vpop.permute.xlu1 %589 }
 0x39a   :  { %v1561_v6 = vpop.eup %1560 }
 0x39b   :  { %v483_v7 = vmul.f32 %v1561_v6, %v1553_v54 }
 0x39d   :  { %1456 = vmatprep.mubr.msk.f32.mxu0 %vm256_vm3, %v483_v7 }
 0x39e   :  { %1457 = vmatmul.mubr.msk.f32.vlgmr.msra.gmra.mxu0 %vm256_vm3, %v484_v8 }
 0x39f   :  { %1460 = vmatpush3.xpose.msk.msra.mxu0 %vm172_vm2, %v594_v0  ;;  %1463 = vmatprep.mubr.msk.f32.mxu0 %vm172_vm2, %v588_v9 }
 0x3a0   :  { %1461 = vmatprep.subr.msk.mxu0 %vm172_vm2, %v592_v1 }
 0x3a3   :  { %1462 = vmatpush3.xpose.msk.msra.mxu0 %vm172_vm2, %v592_v1 }
 0x3a6   :  { %1464 = vmatmul.mubr.msk.f32.vlgmr.msra.gmra.mxu0 %vm172_vm2, %v590_v10 }
 0x429   :  { %v1444_v13 = vpop.f32.mrf.mxu0 }
 0x42a   :  { %367 = vst.msk [vmem:[#allocation3 + $0x8] sm:$0xff] %vm172_vm2, %v1444_v13 }
 0x42b   :  { %v357_v14 = vpop.f32.mrf.mxu0 }
 0x42c   :  { %366 = vst.msk [vmem:[#allocation3] sm:$0xff] %vm172_vm2, %v357_v14  ;;  %v1017_v14 = vld [vmem:[%s1929_s4 + $0x10] sm:$0xff] }
 0x45e   :  { %v1812_v15 = vpop.f32.mrf.mxu0 }
 0x460   :  { %v1814_v16 = vpop.f32.mrf.mxu0 }
 0x466   :  { %v1465_v17 = vpop.f32.mrf.mxu0 }
 0x467   :  { %v675_v18 = vadd.f32 %v1465_v17, %v1776_v19 }
 0x468   :  { %v669_v20 = vpop.f32.mrf.mxu0 }
 0x469   :  { %v670_v22 = vadd.f32 %v669_v20, %v1778_v21  ;;  %v681_v23 = vsel %vm256_vm3, %v675_v18, -inf }
 0x46a   :  { %682 = vmax.xlane.f32.xlu1 %v681_v23 }
 0x46b   :  { %v678_v24 = vsel %vm256_vm3, %v670_v22, -inf }
 0x46c   :  { %679 = vmax.xlane.f32.xlu0 %v678_v24 }
 0x47b   :  { %702 = vrot.lane.b32.xlu1 %v1752_v11, %s1655_s20 }
 0x47f   :  { %808 = vrot.lane.b32.xlu1 %v1752_v11, %s1656_s21 }
 0x483   :  { %806 = vrot.lane.b32.xlu1 %v1756_v12, %s1656_s21 }
 0x487   :  { %804 = vrot.lane.b32.xlu1 %v1752_v11, %s1657_s22 }
 0x4f3   :  { %v683_v25 = vpop.xlane.xlu1 %682 }
 0x4f4   :  { %v685_v26 = vsub.f32 %v675_v18, %v683_v25  ;;  %v1114_v25 = vld [vmem:[%s1931_s6 + $0x18] sm:$0xff] }
 0x4f5   :  { %v680_v27 = vpop.xlane.xlu0 %679 }
 0x4f6   :  { %v688_v28 = vmul.f32 1.442695, %v685_v26  ;;  %v684_v29 = vsub.f32 %v670_v22, %v680_v27  ;;  %v1113_v26 = vld [vmem:[%s1931_s6 + $0x10] sm:$0xff]  ;;  %v1112_v27 = vld [vmem:[%s1931_s6 + $0x8] sm:$0xff] }
 0x4f7   :  { %v703_v30 = vpop.permute.xlu1 %702 }
 0x4f8   :  { %1562 = vpow2.f32 %v688_v28  ;;  %v686_v31 = vmul.f32 1.442695, %v684_v29  ;;  %1466 = vmatprep.subr.mxu1 %v703_v30  ;;  %v1111_v28 = vld [vmem:[%s1931_s6] sm:$0xff]  ;;  %v1212_v29 = vld [vmem:[%s1933_s8 + $0x38] sm:$0xff] }
 0x4f9   :  { %1467 = vmatpush3.msra.mxu1 %v703_v30  ;;  %v1211_v30 = vld [vmem:[%s1933_s8 + $0x30] sm:$0xff] }
 0x4fa   :  { %1564 = vpow2.f32 %v686_v31  ;;  %v1210_v31 = vld [vmem:[%s1933_s8 + $0x28] sm:$0xff] }
 0x4fb   :  { %v809_v39 = vpop.permute.xlu1 %808 }
 0x4ff   :  { %v807_v45 = vpop.permute.xlu1 %806 }
 0x503   :  { %v805_v46 = vpop.permute.xlu1 %804 }
 0x505   :  { %v1563_v32 = vpop.eup %1562 }
 0x506   :  { %v693_v33 = vsel %vm256_vm3, %v1563_v32, 0.0 }
 0x507   :  { %v1565_v34 = vpop.eup %1564  ;;  %694 = vadd.xlane.f32.xlu0 %v693_v33 }
 0x508   :  { %v690_v35 = vsel %vm256_vm3, %v1565_v34, 0.0 }
 0x50b   :  { %691 = vadd.xlane.f32.xlu0 %v690_v35 }
 0x521   :  { %700 = vrot.lane.b32.xlu0 %v1756_v12, %s1655_s20 }
 0x525   :  { %802 = vrot.lane.b32.xlu0 %v1756_v12, %s1657_s22 }
 0x590   :  { %v695_v36 = vpop.xlane.xlu0 %694 }
 0x591   :  { %1566 = vrcp.f32 %v695_v36  ;;  %v1353_v36 = vld [vmem:[%s1930_s5] ss:$0 sm:$0xff] }
 0x594   :  { %v692_v37 = vpop.xlane.xlu0 %691 }
 0x595   :  { %1568 = vrcp.f32 %v692_v37 }
 0x598   :  { %v701_v38 = vpop.permute.xlu0 %700 }
 0x599   :  { %1468 = vmatprep.subr.mxu1 %v701_v38 }
 0x59a   :  { %1469 = vmatpush3.msra.mxu1 %v701_v38 }
 0x59b   :  { %1473 = vmatprep.subr.msk.mxu1 %vm172_vm2, %v809_v39 }
 0x59c   :  { %v803_v44 = vpop.permute.xlu0 %802 }
 0x59e   :  { %v1567_v40 = vpop.eup %1566 }
 0x59f   :  { %v699_v43 = vmul.f32 %v1567_v40, %v1563_v32  ;;  %v1209_v32 = vld [vmem:[%s1933_s8 + $0x20] sm:$0xff]  ;;  %v1208_v40 = vld [vmem:[%s1933_s8 + $0x18] sm:$0xff] }
 0x5a2   :  { %v1569_v41 = vpop.eup %1568 }
 0x5a3   :  { %v698_v42 = vmul.f32 %v1569_v41, %v1565_v34  ;;  %v1205_v41 = vld [vmem:[%s1933_s8] sm:$0xff] }
 0x5a5   :  { %1470 = vmatprep.mubr.msk.f32.mxu1 %vm256_vm3, %v698_v42  ;;  %v1354_v42 = vld [vmem:[%s1932_s7] ss:$0 sm:$0xff] }
 0x5a6   :  { %1471 = vmatmul.mubr.msk.f32.vlgmr.msra.gmra.mxu1 %vm256_vm3, %v699_v43 }
 0x5a7   :  { %1474 = vmatpush3.xpose.msk.msra.mxu1 %vm172_vm2, %v809_v39  ;;  %1477 = vmatprep.mubr.msk.f32.mxu1 %vm172_vm2, %v803_v44 }
 0x5a8   :  { %1475 = vmatprep.subr.msk.mxu1 %vm172_vm2, %v807_v45 }
 0x5ab   :  { %1476 = vmatpush3.xpose.msk.msra.mxu1 %vm172_vm2, %v807_v45 }
 0x5ac   :  { %1498 = vmatprep.subr.mxu1 %v1114_v25 }
 0x5ae   :  { %1478 = vmatmul.mubr.msk.f32.vlgmr.msra.gmra.mxu1 %vm172_vm2, %v805_v46 }
 0x5af   :  { %1499 = vmatpush3.msra.mxu1 %v1114_v25 }
 0x5b0   :  { %1500 = vmatprep.subr.mxu1 %v1113_v26 }
 0x5b1   :  { %1501 = vmatpush3.msra.mxu1 %v1113_v26 }
 0x5b2   :  { %1502 = vmatprep.subr.mxu1 %v1112_v27 }
 0x5b3   :  { %1503 = vmatpush3.msra.mxu1 %v1112_v27 }
 0x5b4   :  { %1504 = vmatprep.subr.mxu1 %v1111_v28 }
 0x5b5   :  { %1505 = vmatpush3.msra.mxu1 %v1111_v28 }
 0x666   :  { %v1472_v47 = vpop.f32.mrf.mxu1 }
 0x668   :  { %v778_v48 = vpop.f32.mrf.mxu1 }
 0x66e   :  { %v1479_v49 = vpop.f32.mrf.mxu1 }
 0x66f   :  { %v890_v50 = vadd.f32 %v1479_v49, %v1776_v19  ;;  %v1357_v49 = vld [vmem:[%s1934_s9] ss:$0 sm:$0xff] }
 0x670   :  { %v884_v51 = vpop.f32.mrf.mxu1 }
 0x671   :  { %v885_v52 = vadd.f32 %v884_v51, %v1778_v21  ;;  %v896_v53 = vsel %vm256_vm3, %v890_v50, -inf }
 0x672   :  { %897 = vmax.xlane.f32.xlu1 %v896_v53 }
 0x673   :  { %v893_v54 = vsel %vm256_vm3, %v885_v52, -inf }
 0x674   :  { %894 = vmax.xlane.f32.xlu0 %v893_v54 }
 0x683   :  { %917 = vrot.lane.b32.xlu1 %v1752_v11, %s1658_s23 }
 0x687   :  { %574 = vrot.lane.b32.xlu1 %v1814_v16, %s1646_s17  ;;  %v1015_v16 = vld [vmem:[%s1929_s4] sm:$0xff] }
 0x68b   :  { %576 = vrot.lane.b32.xlu1 %v1812_v15, %s1646_s17  ;;  %v1016_v15 = vld [vmem:[%s1929_s4 + $0x8] sm:$0xff] }
 0x68f   :  { %791 = vrot.lane.b32.xlu1 %v1472_v47, %s1659_s24 }
 0x6fb   :  { %v898_v19 = vpop.xlane.xlu1 %897 }
 0x6fc   :  { %v900_v21 = vsub.f32 %v890_v50, %v898_v19 }
 0x6fd   :  { %v895_v55 = vpop.xlane.xlu0 %894 }
 0x6fe   :  { %v903_v56 = vmul.f32 1.442695, %v900_v21  ;;  %v899_v57 = vsub.f32 %v885_v52, %v895_v55 }
 0x6ff   :  { %v918_v58 = vpop.permute.xlu1 %917 }
 0x700   :  { %1570 = vpow2.f32 %v903_v56  ;;  %v901_v59 = vmul.f32 1.442695, %v899_v57  ;;  %1480 = vmatprep.subr.mxu0 %v918_v58 }
 0x701   :  { %1481 = vmatpush3.msra.mxu0 %v918_v58 }
 0x702   :  { %1572 = vpow2.f32 %v901_v59 }
 0x703   :  { %v575_v11 = vpop.permute.xlu1 %574 }
 0x704   :  { %581 = vst.msk [vmem:[#allocation3] sm:$0xff] %vm580_vm4, %v575_v11 }
 0x707   :  { %v577_v60 = vpop.permute.xlu1 %576 }
 0x708   :  { %582 = vst.msk [vmem:[#allocation3 + $0x8] sm:$0xff] %vm580_vm4, %v577_v60 }
 0x70b   :  { %v792_v61 = vpop.permute.xlu1 %791 }
 0x70c   :  { %797 = vst.msk [vmem:[#allocation3 + $0x8] sm:$0xff] %vm795_vm5, %v792_v61 }
 0x70d   :  { %v1571_v62 = vpop.eup %1570 }
 0x70e   :  { %v908_v63 = vsel %vm256_vm3, %v1571_v62, 0.0 }
 0x70f   :  { %v1573_v0 = vpop.eup %1572  ;;  %909 = vadd.xlane.f32.xlu0 %v908_v63 }
 0x710   :  { %v905_v1 = vsel %vm256_vm3, %v1573_v0, 0.0 }
 0x713   :  { %906 = vadd.xlane.f32.xlu0 %v905_v1 }
 0x729   :  { %915 = vrot.lane.b32.xlu0 %v1756_v12, %s1658_s23  ;;  %v1018_v12 = vld [vmem:[%s1929_s4 + $0x18] sm:$0xff] }
 0x72d   :  { %789 = vrot.lane.b32.xlu0 %v778_v48, %s1659_s24 }
 0x798   :  { %v910_v3 = vpop.xlane.xlu0 %909 }
 0x799   :  { %1574 = vrcp.f32 %v910_v3 }
 0x79c   :  { %v907_v4 = vpop.xlane.xlu0 %906 }
 0x79d   :  { %1576 = vrcp.f32 %v907_v4 }
 0x7a0   :  { %v916_v6 = vpop.permute.xlu0 %915 }
 0x7a1   :  { %1482 = vmatprep.subr.mxu0 %v916_v6 }
 0x7a2   :  { %1483 = vmatpush3.msra.mxu0 %v916_v6 }
 0x7a3   :  { %1487 = vmatprep.subr.mxu0 %v1018_v12 }
 0x7a4   :  { %v790_v7 = vpop.permute.xlu0 %789 }
 0x7a5   :  { %796 = vst.msk [vmem:[#allocation3] sm:$0xff] %vm795_vm5, %v790_v7 }
 0x7a6   :  { %v1575_v8 = vpop.eup %1574 }
 0x7a7   :  { %v914_v13 = vmul.f32 %v1575_v8, %v1571_v62 }
 0x7aa   :  { %v1577_v9 = vpop.eup %1576 }
 0x7ab   :  { %v913_v10 = vmul.f32 %v1577_v9, %v1573_v0 }
 0x7ad   :  { %1484 = vmatprep.mubr.msk.f32.mxu0 %vm256_vm3, %v913_v10 }
 0x7ae   :  { %1485 = vmatmul.mubr.msk.f32.vlgmr.msra.gmra.mxu0 %vm256_vm3, %v914_v13 }
 0x7af   :  { %1488 = vmatpush3.msra.mxu0 %v1018_v12 }
 0x7b0   :  { %1489 = vmatprep.subr.mxu0 %v1017_v14 }
 0x7b1   :  { %1490 = vmatpush3.msra.mxu0 %v1017_v14 }
 0x7b2   :  { %1491 = vmatprep.subr.mxu0 %v1016_v15 }
 0x7b3   :  { %1492 = vmatpush3.msra.mxu0 %v1016_v15 }
 0x7b4   :  { %1493 = vmatprep.subr.mxu0 %v1015_v16 }
 0x7b5   :  { %1494 = vmatpush3.msra.mxu0 %v1015_v16 }
 0x7b6   :  { %1509 = vmatprep.subr.mxu0 %v1212_v29 }
 0x86e   :  { %v1486_v17 = vpop.f32.mrf.mxu0 }
 0x86f   :  { %1006 = vrot.lane.b32.xlu1 %v1486_v17, %s1660_s11 }
 0x870   :  { %v993_v18 = vpop.f32.mrf.mxu0 }
 0x871   :  { %1004 = vrot.lane.b32.xlu0 %v993_v18, %s1660_s11 }
 0x8e1   :  { %v1007_v20 = vpop.permute.xlu1 %1006 }
 0x8e2   :  { %1012 = vst.msk [vmem:[#allocation3 + $0x8] sm:$0xff] %vm1010_vm6, %v1007_v20 }
 0x8e3   :  { %v1005_v22 = vpop.permute.xlu0 %1004 }
 0x8e4   :  { %1011 = vst.msk [vmem:[#allocation3] sm:$0xff] %vm1010_vm6, %v1005_v22 }
 0x8e9   :  { %v1014_v24 = vld [vmem:[#allocation3 + $0x8] sm:$0xff] }
 0x8eb   :  { %v1013_v23 = vld [vmem:[#allocation3] sm:$0xff] }
 0x8ec   :  { %1495 = vmatprep.mubr.msk.f32.mxu0 %vm77_vm0, %v1013_v23 }
 0x8ed   :  { %1496 = vmatmul.mubr.msk.f32.vlgmr.msra.gmra.mxu0 %vm77_vm0, %v1014_v24 }
 0x8ee   :  { %1510 = vmatpush3.msra.mxu0 %v1212_v29 }
 0x8ef   :  { %1511 = vmatprep.subr.mxu0 %v1211_v30 }
 0x8f0   :  { %1512 = vmatpush3.msra.mxu0 %v1211_v30 }
 0x8f1   :  { %1513 = vmatprep.subr.mxu0 %v1210_v31 }
 0x8f2   :  { %1514 = vmatpush3.msra.mxu0 %v1210_v31 }
 0x8f3   :  { %1515 = vmatprep.subr.mxu0 %v1209_v32 }
 0x8f4   :  { %1516 = vmatpush3.msra.mxu0 %v1209_v32 }
 0x8f5   :  { %1517 = vmatprep.subr.mxu0 %v1208_v40 }
 0x8f6   :  { %1518 = vmatpush3.msra.mxu0 %v1208_v40 }
 0x9ad   :  { %v1497_v33 = vpop.f32.mrf.mxu0 }
 0x9ae   :  { %v1101_v34 = vadd.f32 %v1497_v33, %v1745_v5  ;;  %v1207_v5 = vld [vmem:[%s1933_s8 + $0x10] sm:$0xff] }
 0x9af   :  { %v1091_v35 = vpop.f32.mrf.mxu0  ;;  %1519 = vmatprep.subr.mxu0 %v1207_v5 }
 0x9b0   :  { %v1100_v37 = vadd.f32 %v1091_v35, %v1735_v2  ;;  %v1110_v39 = vadd.f32 %v1353_v36, %v1101_v34  ;;  %1520 = vmatpush3.msra.mxu0 %v1207_v5  ;;  %v1206_v2 = vld [vmem:[%s1933_s8 + $0x8] sm:$0xff]  ;;  %s1661_s8 = smov [#allocation9]  }
 0x9b1   :  { %1521 = vmatprep.subr.mxu0 %v1206_v2  ;;  %s1311_s14 = sshll.u32 %s1661_s8, 4  ;;  %s1312_s14 = int_to_ptr.vmem [resolvable:$true] %s1311_s14 }
 0x9b2   :  { %v1109_v38 = vadd.f32 %v1353_v36, %v1100_v37  ;;  %1522 = vmatpush3.msra.mxu0 %v1206_v2  ;;  %s1618_s7 = scalar_lea.vmem %s1312_s14, 256  ;;  %p1623_p11 = scmp.lt.s32.totalorder %s1312_s14, %s1312_s14 }
 0x9b3   :  { %1523 = vmatprep.subr.mxu0 %v1205_v41  ;;  %p1619_p10 = scmp.ne.s32.totalorder %s1312_s14, %s1618_s7  ;;  %p1624_p12 = scmp.lt.s32.totalorder %s1618_s7, %s1618_s7 }
 0x9b4   :  { %1506 = vmatprep.mubr.msk.f32.mxu1 %vm77_vm0, %v1109_v38  ;;  %1524 = vmatpush3.msra.mxu0 %v1205_v41 }
 0x9b5   :  { %1507 = vmatmul.mubr.msk.f32.vlgmr.msra.gmra.mxu1 %vm77_vm0, %v1110_v39  ;;  %p1625_p13 = por %p1624_p12, %p1623_p11 }
 0x9b7   :  { %p1626_p0 = pnand %p1625_p13, %p1619_p10 }
 0xa75   :  { %v1508_v43 = vpop.f32.mrf.mxu1 }
 0xa76   :  { %v1200_v44 = vadd.f32 %v1508_v43, %v1354_v42 }
 0xa77   :  { %v1194_v45 = vpop.f32.mrf.mxu1 }
 0xa78   :  { %v1195_v46 = vadd.f32 %v1354_v42, %v1194_v45  ;;  %v1204_v48 = vmax.f32 %v1200_v44, 0.0 }
 0xa7a   :  { %v1203_v47 = vmax.f32 %v1195_v46, 0.0 }
 0xa7c   :  { %1525 = vmatprep.mubr.msk.f32.mxu0 %vm1220_vm7, %v1203_v47 }
 0xa7d   :  { %1526 = vmatmul.mubr.msk.f32.vlgmr.msra.gmra.mxu0 %vm1220_vm7, %v1204_v48 }
 0xb3d   :  { %v1527_v50 = vpop.f32.mrf.mxu0 }
 0xb3e   :  { %v1299_v51 = vadd.f32 %v1527_v50, %v1357_v49 }
 0xb3f   :  { %v1293_v52 = vpop.f32.mrf.mxu0 }
 0xb40   :  { %v1303_v53 = vadd.f32 %v1299_v51, %v1110_v39  ;;  %v1294_v54 = vadd.f32 %v1357_v49, %v1293_v52 }
 0xb42   :  { %1305 = vst.msk [vmem:[#allocation9 + $0x8] sm:$0xff] %vm77_vm0, %v1303_v53  ;;  %v1302_v19 = vadd.f32 %v1294_v54, %v1109_v38 }
 0xb44   :  { %1304 = vst.msk [vmem:[#allocation9] sm:$0xff] %vm77_vm0, %v1302_v19 }
 0xb45   :  { %1629 = shalt.err (!%p1626_p0)
}
 0xb46   :  { %1317 = dma.vmem_to_hbm [thread:$0]  %s1312_s14, 256, %s1935_s10, [#allocation6], %s1645_s16, %s1645_s16, %s1646_s17  }
 0xb47   :  { %1642 = dma.done.wait [#allocation6], 256  }
 0xb48   :  { %1643 = vsyncadd [#allocation6], 4294967040 }
 0xb49   :  { %1321 = vsyncpa [#allocation5], 1 }
 0xb4a   :  { %1322 = vsyncpa [#allocation8], 1 }
 0xb4b   :  { %1323 = vsyncpa [#allocation6], 1 }

</bundles_post_ra>
